<compile_context>
chip_gen: v5e
topology: v5e:2x2
jax: 0.10.0
libtpu: 0.0.40
codegen_flags: <defaults>
</compile_context>

<pallas_src>
import math
import functools

import jax
import jax.numpy as jnp
from jax.experimental import pallas as pl
from jax.experimental.pallas import tpu as pltpu


def _sab_kernel(x_ref, wqkv_ref, bqkv_ref, wo_ref, bo_ref, out_ref, o_scr,
                *, num_heads, dim_v, n_set, mm_dtype):
    rows = x_ref.shape[0]              # block_b * n_set
    bb = rows // n_set
    ds = dim_v // num_heads

    # ---- fused Q/K/V projection: single MXU matmul over all rows in the block
    x = x_ref[...]                                                  # [rows, dim_in]
    qkv = jnp.dot(x, wqkv_ref[...],
                  preferred_element_type=jnp.float32) + bqkv_ref[...]   # [rows, 3*dim_v] f32
    qkv3 = qkv.reshape(bb, n_set, 3 * dim_v)                        # leading-dim split only
    q3 = qkv3[:, :, :dim_v]
    k3 = qkv3[:, :, dim_v:2 * dim_v]        # 1/sqrt(dim_V) pre-folded into Wk/bk
    v3 = qkv3[:, :, 2 * dim_v:]

    # ---- per-head attention, batched over the bb batch elements in this block
    for h in range(num_heads):                                      # static unroll (small H)
        sl = slice(h * ds, (h + 1) * ds)
        qh, kh, vh = q3[:, :, sl], k3[:, :, sl], v3[:, :, sl]       # [bb, N, ds] f32
        # contract last dims of both operands directly -> no transpose materialized
        s = jnp.einsum("bnd,bmd->bnm",
                       qh.astype(mm_dtype), kh.astype(mm_dtype),
                       preferred_element_type=jnp.float32)          # [bb, N, N] f32
        s = s - jnp.max(s, axis=-1, keepdims=True)
        p = jnp.exp(s)                                              # unnormalized probs, <= 1
        denom = jnp.sum(p, axis=-1, keepdims=True)
        inv = pl.reciprocal(denom, approx=True)                     # EUP slot
        inv = inv * (2.0 - denom * inv)                             # one Newton step -> ~f32 accuracy
        av = jnp.einsum("bnm,bmd->bnd",
                        p.astype(mm_dtype), vh.astype(mm_dtype),
                        preferred_element_type=jnp.float32)         # [bb, N, ds]
        # normalize AFTER the matmul (N*ds mults instead of N*N), add residual,
        # and write the head result straight into its lane slice (no concatenate)
        o_scr[:, :, sl] = qh + av * inv

    # ---- O = O + relu(fc_o(O)): one matmul over all rows in the block
    o = o_scr[...].reshape(rows, dim_v)                             # leading-dim merge only
    oo = jnp.dot(o.astype(wo_ref.dtype), wo_ref[...],
                 preferred_element_type=jnp.float32) + bo_ref[...]
    out_ref[...] = (o + jnp.maximum(oo, 0.0)).astype(out_ref.dtype)


def _pick_block_b(batch, n_set, target_rows=256):
    """Largest divisor of `batch` so that block_b * n_set stays near target_rows.

    (On v7x, with its 2 TensorCores and 64 MiB VMEM, prefer a block_b that
    leaves >=2 grid steps and a smaller VMEM footprint; at these tiny shapes
    any choice fits comfortably.)
    """
    cap = max(1, target_rows // max(n_set, 1))
    best = 1
    for d in range(1, batch + 1):
        if batch % d == 0 and d <= cap:
            best = d
    return best


def sab_forward(x, params, *, num_heads, block_b=None,
                compute_dtype=jnp.float32, target_rows=256):
    """x: [B, N, dim_in]; params dict with [in, out]-transposed weights.

    compute_dtype: dtype of the matmul operands (weights / X / attention
    operands). Use jnp.bfloat16 on v6e/v7x for full-rate MXU + halved DMA
    bytes; accumulation, softmax and all elementwise math stay float32
    (safe on v5e as well). Returns [B, N, dim_V] float32.
    """
    B, N, dim_in = x.shape
    dim_v = params["wq"].shape[1]
    assert dim_v % num_heads == 0

    # Fused QKV weights/bias -> one wide matmul instead of three narrow ones.
    # Fold 1/sqrt(dim_V) into the K columns once (constant fold, not per-call
    # activation scaling), so the kernel never multiplies by the scale.
    inv_scale = 1.0 / math.sqrt(dim_v)   # PyTorch MAB scales by sqrt(dim_V), not sqrt(head_dim)
    wqkv = jnp.concatenate(
        [params["wq"], params["wk"] * inv_scale, params["wv"]], axis=1)   # [dim_in, 3*dim_v]
    bqkv = jnp.concatenate(
        [params["bq"], params["bk"] * inv_scale, params["bv"]], axis=1)   # [1, 3*dim_v]
    wo, bo = params["wo"], params["bo"]

    # Optional bf16 matmul operands (biases + accumulation stay f32).
    x_in = x.astype(compute_dtype)
    wqkv = wqkv.astype(compute_dtype)
    wo = wo.astype(compute_dtype)

    if block_b is None:
        block_b = _pick_block_b(B, N, target_rows)
    assert B % block_b == 0, "block_b must divide the batch"
    rows = block_b * N

    # Flatten (B, N) into one row axis so every grid step feeds block_b*N rows
    # to the MXU (free reshape: contiguous in HBM).
    x2 = x_in.reshape(B * N, dim_in)

    kernel = functools.partial(_sab_kernel, num_heads=num_heads,
                               dim_v=dim_v, n_set=N, mm_dtype=compute_dtype)

    flops = (2 * B * N * dim_in * 3 * dim_v      # fused QKV projection
             + 4 * B * N * N * dim_v             # scores + A@V over all heads
             + 2 * B * N * dim_v * dim_v)        # fc_o
    transcendentals = B * num_heads * N * N + B * num_heads * N
    bytes_accessed = (x2.size * x2.dtype.itemsize
                      + B * N * dim_v * 4
                      + wqkv.size * wqkv.dtype.itemsize
                      + bqkv.size * bqkv.dtype.itemsize
                      + wo.size * wo.dtype.itemsize
                      + bo.size * bo.dtype.itemsize)

    out2 = pl.pallas_call(
        kernel,
        out_shape=jax.ShapeDtypeStruct((B * N, dim_v), jnp.float32),
        grid_spec=pltpu.PrefetchScalarGridSpec(
            num_scalar_prefetch=0,
            grid=(B // block_b,),
            in_specs=[
                pl.BlockSpec((rows, dim_in), lambda i: (i, 0)),        # X rows
                pl.BlockSpec((dim_in, 3 * dim_v), lambda i: (0, 0)),   # fused Wqkv
                pl.BlockSpec((1, 3 * dim_v), lambda i: (0, 0)),        # fused bias
                pl.BlockSpec((dim_v, dim_v), lambda i: (0, 0)),        # Wo
                pl.BlockSpec((1, dim_v), lambda i: (0, 0)),            # bo
            ],
            out_specs=pl.BlockSpec((rows, dim_v), lambda i: (i, 0)),
            scratch_shapes=[pltpu.VMEM((block_b, N, dim_v), jnp.float32)],
        ),
        compiler_params=pltpu.CompilerParams(
            dimension_semantics=("parallel",)),
        cost_estimate=pl.CostEstimate(flops=flops,
                                      transcendentals=transcendentals,
                                      bytes_accessed=bytes_accessed),
    )(x2, wqkv, bqkv, wo, bo)

    return out2.reshape(B, N, dim_v)


def sab_reference(x, params, *, num_heads):
    """Pure-JAX reference mirroring the PyTorch MAB forward (ln=False)."""
    dim_v = params["wq"].shape[1]
    q = x @ params["wq"] + params["bq"]
    k = x @ params["wk"] + params["bk"]
    v = x @ params["wv"] + params["bv"]
    ds = dim_v // num_heads
    outs = []
    for h in range(num_heads):
        sl = slice(h * ds, (h + 1) * ds)
        qh, kh, vh = q[..., sl], k[..., sl], v[..., sl]
        s = jnp.einsum("bnd,bmd->bnm", qh, kh) / math.sqrt(dim_v)
        p = jax.nn.softmax(s, axis=-1)
        outs.append(qh + jnp.einsum("bnm,bmd->bnd", p, vh))
    o = jnp.concatenate(outs, axis=-1)
    oo = o @ params["wo"] + params["bo"]
    return o + jnp.maximum(oo, 0.0)


def init_params(key, dim_in, dim_v):
    """Deterministic init; PyTorch-Linear-style uniform(-1/sqrt(fan_in), +)."""
    ks = jax.random.split(key, 8)
    def lin(kw, kb, fan_in, fan_out):
        bound = 1.0 / math.sqrt(fan_in)
        w = jax.random.uniform(kw, (fan_in, fan_out), jnp.float32, -bound, bound)
        b = jax.random.uniform(kb, (1, fan_out), jnp.float32, -bound, bound)
        return w, b
    wq, bq = lin(ks[0], ks[1], dim_in, dim_v)
    wk, bk = lin(ks[2], ks[3], dim_in, dim_v)
    wv, bv = lin(ks[4], ks[5], dim_in, dim_v)
    wo, bo = lin(ks[6], ks[7], dim_v, dim_v)
    return dict(wq=wq, bq=bq, wk=wk, bk=bk, wv=wv, bv=bv, wo=wo, bo=bo)


if __name__ == "__main__":
    B, N, DIM_IN, DIM_V, NUM_HEADS = 2, 8, 16, 32, 4

    key = jax.random.PRNGKey(0)
    k_x, k_p = jax.random.split(key)
    x = jax.random.normal(k_x, (B, N, DIM_IN), jnp.float32)
    params = init_params(k_p, DIM_IN, DIM_V)

    ref = sab_reference(x, params, num_heads=NUM_HEADS)

    # Default float32 path: tight check against the pure-JAX reference.
    out = jax.block_until_ready(sab_forward(x, params, num_heads=NUM_HEADS))
    assert out.shape == (B, N, DIM_V)
    err = jnp.max(jnp.abs(out - ref))
    assert jnp.allclose(out, ref, atol=1e-4, rtol=1e-4), f"f32 max abs err {err}"

    # Optional bf16 matmul-operand path (v6e/v7x recommendation): loose check.
    out_bf16 = jax.block_until_ready(
        sab_forward(x, params, num_heads=NUM_HEADS, compute_dtype=jnp.bfloat16))
    err16 = jnp.max(jnp.abs(out_bf16 - ref))
    assert jnp.allclose(out_bf16, ref, atol=1e-1, rtol=1e-1), f"bf16 max abs err {err16}"

    print("KERNEL_OK")
</pallas_src>

<mosaic_0001>
module attributes {stable_mosaic.version = 11 : i64} {
  func.func @_sab_kernel(%arg0: i32, %arg1: memref<16x16xf32, #tpu.memory_space<vmem>>, %arg2: memref<16x96xf32, #tpu.memory_space<vmem>>, %arg3: memref<1x96xf32, #tpu.memory_space<vmem>>, %arg4: memref<32x32xf32, #tpu.memory_space<vmem>>, %arg5: memref<1x32xf32, #tpu.memory_space<vmem>>, %arg6: memref<16x32xf32, #tpu.memory_space<vmem>>, %arg7: memref<2x8x32xf32, #tpu.memory_space<vmem>>) attributes {dimension_semantics = [#tpu.dimension_semantics<parallel>], iteration_bounds = array<i64: 1>, scalar_prefetch = 0 : i64, scratch_operands = 1 : i64, tpu.core_type = #tpu.core_type<tc>, window_params = [{transform_indices = @transform_0, window_bounds = array<i64: 16, 16>}, {pipeline_mode = #tpu.pipeline_mode<synchronous>, transform_indices = @transform_1, window_bounds = array<i64: 16, 96>}, {pipeline_mode = #tpu.pipeline_mode<synchronous>, transform_indices = @transform_2, window_bounds = array<i64: 1, 96>}, {pipeline_mode = #tpu.pipeline_mode<synchronous>, transform_indices = @transform_3, window_bounds = array<i64: 32, 32>}, {pipeline_mode = #tpu.pipeline_mode<synchronous>, transform_indices = @transform_4, window_bounds = array<i64: 1, 32>}, {transform_indices = @transform_5, window_bounds = array<i64: 16, 32>}]} {
    %c0 = arith.constant 0 : index
    %c0_0 = arith.constant 0 : index
    %0 = vector.load %arg1[%c0, %c0_0] : memref<16x16xf32, #tpu.memory_space<vmem>>, vector<16x16xf32>
    %c0_1 = arith.constant 0 : index
    %c0_2 = arith.constant 0 : index
    %1 = vector.load %arg2[%c0_1, %c0_2] : memref<16x96xf32, #tpu.memory_space<vmem>>, vector<16x96xf32>
    %cst = arith.constant dense<0.000000e+00> : vector<16x96xf32>
    %2 = tpu.matmul %0, %1, %cst {dimension_numbers = #tpu.dot_dimension_numbers<[1], [0], [0], [1], [0, 0, 1, 1], [], []>} : vector<16x16xf32>, vector<16x96xf32>, vector<16x96xf32> -> vector<16x96xf32>
    %c0_3 = arith.constant 0 : index
    %c0_4 = arith.constant 0 : index
    %3 = vector.load %arg3[%c0_3, %c0_4] : memref<1x96xf32, #tpu.memory_space<vmem>>, vector<1x96xf32>
    %4 = vector.broadcast %3 : vector<1x96xf32> to vector<16x96xf32>
    %5 = arith.addf %2, %4 : vector<16x96xf32>
    %6 = vector.shape_cast %5 : vector<16x96xf32> to vector<2x8x96xf32>
    %7 = vector.extract_strided_slice %6 {offsets = [0, 0, 0], sizes = [2, 8, 32], strides = [1, 1, 1]} : vector<2x8x96xf32> to vector<2x8x32xf32>
    %8 = vector.extract_strided_slice %6 {offsets = [0, 0, 32], sizes = [2, 8, 32], strides = [1, 1, 1]} : vector<2x8x96xf32> to vector<2x8x32xf32>
    %9 = vector.extract_strided_slice %6 {offsets = [0, 0, 64], sizes = [2, 8, 32], strides = [1, 1, 1]} : vector<2x8x96xf32> to vector<2x8x32xf32>
    %10 = vector.extract_strided_slice %7 {offsets = [0, 0, 0], sizes = [2, 8, 8], strides = [1, 1, 1]} : vector<2x8x32xf32> to vector<2x8x8xf32>
    %11 = vector.extract_strided_slice %8 {offsets = [0, 0, 0], sizes = [2, 8, 8], strides = [1, 1, 1]} : vector<2x8x32xf32> to vector<2x8x8xf32>
    %12 = vector.extract_strided_slice %9 {offsets = [0, 0, 0], sizes = [2, 8, 8], strides = [1, 1, 1]} : vector<2x8x32xf32> to vector<2x8x8xf32>
    "tpu.trace_start"() <{level = 10 : i32, message = "bnd,bmd->bnm"}> : () -> ()
    %cst_5 = arith.constant dense<0.000000e+00> : vector<2x8x8xf32>
    %13 = tpu.matmul %10, %11, %cst_5 {dimension_numbers = #tpu.dot_dimension_numbers<[2], [2], [1], [1], [0, 0, 0, 1, 1, 1], [0], [0]>} : vector<2x8x8xf32>, vector<2x8x8xf32>, vector<2x8x8xf32> -> vector<2x8x8xf32>
    "tpu.trace_stop"() : () -> ()
    %cst_6 = arith.constant dense<0xFF800000> : vector<2x8xf32>
    %14 = vector.multi_reduction <maximumf>, %13, %cst_6 [2] : vector<2x8x8xf32> to vector<2x8xf32>
    %15 = vector.shape_cast %14 : vector<2x8xf32> to vector<2x8x1xf32>
    %16 = vector.broadcast %15 : vector<2x8x1xf32> to vector<2x8x8xf32>
    %17 = arith.subf %13, %16 : vector<2x8x8xf32>
    %18 = math.exp %17 : vector<2x8x8xf32>
    %cst_7 = arith.constant dense<0.000000e+00> : vector<2x8xf32>
    %19 = vector.multi_reduction <add>, %18, %cst_7 [2] : vector<2x8x8xf32> to vector<2x8xf32>
    %20 = vector.shape_cast %19 : vector<2x8xf32> to vector<2x8x1xf32>
    %21 = tpu.reciprocal %20 {approx = true} : vector<2x8x1xf32> -> vector<2x8x1xf32>
    %22 = arith.mulf %20, %21 : vector<2x8x1xf32>
    %cst_8 = arith.constant 2.000000e+00 : f32
    %23 = vector.broadcast %cst_8 : f32 to vector<2x8x1xf32>
    %24 = arith.subf %23, %22 : vector<2x8x1xf32>
    %25 = arith.mulf %21, %24 : vector<2x8x1xf32>
    "tpu.trace_start"() <{level = 10 : i32, message = "bnm,bmd->bnd"}> : () -> ()
    %cst_9 = arith.constant dense<0.000000e+00> : vector<2x8x8xf32>
    %26 = tpu.matmul %18, %12, %cst_9 {dimension_numbers = #tpu.dot_dimension_numbers<[2], [1], [1], [2], [0, 0, 0, 1, 1, 2], [0], [0]>} : vector<2x8x8xf32>, vector<2x8x8xf32>, vector<2x8x8xf32> -> vector<2x8x8xf32>
    "tpu.trace_stop"() : () -> ()
    %27 = vector.broadcast %25 : vector<2x8x1xf32> to vector<2x8x8xf32>
    %28 = arith.mulf %26, %27 : vector<2x8x8xf32>
    %29 = arith.addf %10, %28 : vector<2x8x8xf32>
    %c0_10 = arith.constant 0 : index
    %c0_11 = arith.constant 0 : index
    %c0_12 = arith.constant 0 : index
    %30 = vector.load %arg7[%c0_10, %c0_11, %c0_12] : memref<2x8x32xf32, #tpu.memory_space<vmem>>, vector<2x8x8xf32>
    tpu.vector_store %arg7[%c0_10, %c0_11, %c0_12], %29 {strides = array<i32>} : memref<2x8x32xf32, #tpu.memory_space<vmem>>, vector<2x8x8xf32>,
    %31 = vector.extract_strided_slice %7 {offsets = [0, 0, 8], sizes = [2, 8, 8], strides = [1, 1, 1]} : vector<2x8x32xf32> to vector<2x8x8xf32>
    %32 = vector.extract_strided_slice %8 {offsets = [0, 0, 8], sizes = [2, 8, 8], strides = [1, 1, 1]} : vector<2x8x32xf32> to vector<2x8x8xf32>
    %33 = vector.extract_strided_slice %9 {offsets = [0, 0, 8], sizes = [2, 8, 8], strides = [1, 1, 1]} : vector<2x8x32xf32> to vector<2x8x8xf32>
    "tpu.trace_start"() <{level = 10 : i32, message = "bnd,bmd->bnm"}> : () -> ()
    %cst_13 = arith.constant dense<0.000000e+00> : vector<2x8x8xf32>
    %34 = tpu.matmul %31, %32, %cst_13 {dimension_numbers = #tpu.dot_dimension_numbers<[2], [2], [1], [1], [0, 0, 0, 1, 1, 1], [0], [0]>} : vector<2x8x8xf32>, vector<2x8x8xf32>, vector<2x8x8xf32> -> vector<2x8x8xf32>
    "tpu.trace_stop"() : () -> ()
    %cst_14 = arith.constant dense<0xFF800000> : vector<2x8xf32>
    %35 = vector.multi_reduction <maximumf>, %34, %cst_14 [2] : vector<2x8x8xf32> to vector<2x8xf32>
    %36 = vector.shape_cast %35 : vector<2x8xf32> to vector<2x8x1xf32>
    %37 = vector.broadcast %36 : vector<2x8x1xf32> to vector<2x8x8xf32>
    %38 = arith.subf %34, %37 : vector<2x8x8xf32>
    %39 = math.exp %38 : vector<2x8x8xf32>
    %cst_15 = arith.constant dense<0.000000e+00> : vector<2x8xf32>
    %40 = vector.multi_reduction <add>, %39, %cst_15 [2] : vector<2x8x8xf32> to vector<2x8xf32>
    %41 = vector.shape_cast %40 : vector<2x8xf32> to vector<2x8x1xf32>
    %42 = tpu.reciprocal %41 {approx = true} : vector<2x8x1xf32> -> vector<2x8x1xf32>
    %43 = arith.mulf %41, %42 : vector<2x8x1xf32>
    %cst_16 = arith.constant 2.000000e+00 : f32
    %44 = vector.broadcast %cst_16 : f32 to vector<2x8x1xf32>
    %45 = arith.subf %44, %43 : vector<2x8x1xf32>
    %46 = arith.mulf %42, %45 : vector<2x8x1xf32>
    "tpu.trace_start"() <{level = 10 : i32, message = "bnm,bmd->bnd"}> : () -> ()
    %cst_17 = arith.constant dense<0.000000e+00> : vector<2x8x8xf32>
    %47 = tpu.matmul %39, %33, %cst_17 {dimension_numbers = #tpu.dot_dimension_numbers<[2], [1], [1], [2], [0, 0, 0, 1, 1, 2], [0], [0]>} : vector<2x8x8xf32>, vector<2x8x8xf32>, vector<2x8x8xf32> -> vector<2x8x8xf32>
    "tpu.trace_stop"() : () -> ()
    %48 = vector.broadcast %46 : vector<2x8x1xf32> to vector<2x8x8xf32>
    %49 = arith.mulf %47, %48 : vector<2x8x8xf32>
    %50 = arith.addf %31, %49 : vector<2x8x8xf32>
    %c0_18 = arith.constant 0 : index
    %c0_19 = arith.constant 0 : index
    %c8 = arith.constant 8 : index
    %51 = vector.load %arg7[%c0_18, %c0_19, %c8] : memref<2x8x32xf32, #tpu.memory_space<vmem>>, vector<2x8x8xf32>
    tpu.vector_store %arg7[%c0_18, %c0_19, %c8], %50 {strides = array<i32>} : memref<2x8x32xf32, #tpu.memory_space<vmem>>, vector<2x8x8xf32>,
    %52 = vector.extract_strided_slice %7 {offsets = [0, 0, 16], sizes = [2, 8, 8], strides = [1, 1, 1]} : vector<2x8x32xf32> to vector<2x8x8xf32>
    %53 = vector.extract_strided_slice %8 {offsets = [0, 0, 16], sizes = [2, 8, 8], strides = [1, 1, 1]} : vector<2x8x32xf32> to vector<2x8x8xf32>
    %54 = vector.extract_strided_slice %9 {offsets = [0, 0, 16], sizes = [2, 8, 8], strides = [1, 1, 1]} : vector<2x8x32xf32> to vector<2x8x8xf32>
    "tpu.trace_start"() <{level = 10 : i32, message = "bnd,bmd->bnm"}> : () -> ()
    %cst_20 = arith.constant dense<0.000000e+00> : vector<2x8x8xf32>
    %55 = tpu.matmul %52, %53, %cst_20 {dimension_numbers = #tpu.dot_dimension_numbers<[2], [2], [1], [1], [0, 0, 0, 1, 1, 1], [0], [0]>} : vector<2x8x8xf32>, vector<2x8x8xf32>, vector<2x8x8xf32> -> vector<2x8x8xf32>
    "tpu.trace_stop"() : () -> ()
    %cst_21 = arith.constant dense<0xFF800000> : vector<2x8xf32>
    %56 = vector.multi_reduction <maximumf>, %55, %cst_21 [2] : vector<2x8x8xf32> to vector<2x8xf32>
    %57 = vector.shape_cast %56 : vector<2x8xf32> to vector<2x8x1xf32>
    %58 = vector.broadcast %57 : vector<2x8x1xf32> to vector<2x8x8xf32>
    %59 = arith.subf %55, %58 : vector<2x8x8xf32>
    %60 = math.exp %59 : vector<2x8x8xf32>
    %cst_22 = arith.constant dense<0.000000e+00> : vector<2x8xf32>
    %61 = vector.multi_reduction <add>, %60, %cst_22 [2] : vector<2x8x8xf32> to vector<2x8xf32>
    %62 = vector.shape_cast %61 : vector<2x8xf32> to vector<2x8x1xf32>
    %63 = tpu.reciprocal %62 {approx = true} : vector<2x8x1xf32> -> vector<2x8x1xf32>
    %64 = arith.mulf %62, %63 : vector<2x8x1xf32>
    %cst_23 = arith.constant 2.000000e+00 : f32
    %65 = vector.broadcast %cst_23 : f32 to vector<2x8x1xf32>
    %66 = arith.subf %65, %64 : vector<2x8x1xf32>
    %67 = arith.mulf %63, %66 : vector<2x8x1xf32>
    "tpu.trace_start"() <{level = 10 : i32, message = "bnm,bmd->bnd"}> : () -> ()
    %cst_24 = arith.constant dense<0.000000e+00> : vector<2x8x8xf32>
    %68 = tpu.matmul %60, %54, %cst_24 {dimension_numbers = #tpu.dot_dimension_numbers<[2], [1], [1], [2], [0, 0, 0, 1, 1, 2], [0], [0]>} : vector<2x8x8xf32>, vector<2x8x8xf32>, vector<2x8x8xf32> -> vector<2x8x8xf32>
    "tpu.trace_stop"() : () -> ()
    %69 = vector.broadcast %67 : vector<2x8x1xf32> to vector<2x8x8xf32>
    %70 = arith.mulf %68, %69 : vector<2x8x8xf32>
    %71 = arith.addf %52, %70 : vector<2x8x8xf32>
    %c0_25 = arith.constant 0 : index
    %c0_26 = arith.constant 0 : index
    %c16 = arith.constant 16 : index
    %72 = vector.load %arg7[%c0_25, %c0_26, %c16] : memref<2x8x32xf32, #tpu.memory_space<vmem>>, vector<2x8x8xf32>
    tpu.vector_store %arg7[%c0_25, %c0_26, %c16], %71 {strides = array<i32>} : memref<2x8x32xf32, #tpu.memory_space<vmem>>, vector<2x8x8xf32>,
    %73 = vector.extract_strided_slice %7 {offsets = [0, 0, 24], sizes = [2, 8, 8], strides = [1, 1, 1]} : vector<2x8x32xf32> to vector<2x8x8xf32>
    %74 = vector.extract_strided_slice %8 {offsets = [0, 0, 24], sizes = [2, 8, 8], strides = [1, 1, 1]} : vector<2x8x32xf32> to vector<2x8x8xf32>
    %75 = vector.extract_strided_slice %9 {offsets = [0, 0, 24], sizes = [2, 8, 8], strides = [1, 1, 1]} : vector<2x8x32xf32> to vector<2x8x8xf32>
    "tpu.trace_start"() <{level = 10 : i32, message = "bnd,bmd->bnm"}> : () -> ()
    %cst_27 = arith.constant dense<0.000000e+00> : vector<2x8x8xf32>
    %76 = tpu.matmul %73, %74, %cst_27 {dimension_numbers = #tpu.dot_dimension_numbers<[2], [2], [1], [1], [0, 0, 0, 1, 1, 1], [0], [0]>} : vector<2x8x8xf32>, vector<2x8x8xf32>, vector<2x8x8xf32> -> vector<2x8x8xf32>
    "tpu.trace_stop"() : () -> ()
    %cst_28 = arith.constant dense<0xFF800000> : vector<2x8xf32>
    %77 = vector.multi_reduction <maximumf>, %76, %cst_28 [2] : vector<2x8x8xf32> to vector<2x8xf32>
    %78 = vector.shape_cast %77 : vector<2x8xf32> to vector<2x8x1xf32>
    %79 = vector.broadcast %78 : vector<2x8x1xf32> to vector<2x8x8xf32>
    %80 = arith.subf %76, %79 : vector<2x8x8xf32>
    %81 = math.exp %80 : vector<2x8x8xf32>
    %cst_29 = arith.constant dense<0.000000e+00> : vector<2x8xf32>
    %82 = vector.multi_reduction <add>, %81, %cst_29 [2] : vector<2x8x8xf32> to vector<2x8xf32>
    %83 = vector.shape_cast %82 : vector<2x8xf32> to vector<2x8x1xf32>
    %84 = tpu.reciprocal %83 {approx = true} : vector<2x8x1xf32> -> vector<2x8x1xf32>
    %85 = arith.mulf %83, %84 : vector<2x8x1xf32>
    %cst_30 = arith.constant 2.000000e+00 : f32
    %86 = vector.broadcast %cst_30 : f32 to vector<2x8x1xf32>
    %87 = arith.subf %86, %85 : vector<2x8x1xf32>
    %88 = arith.mulf %84, %87 : vector<2x8x1xf32>
    "tpu.trace_start"() <{level = 10 : i32, message = "bnm,bmd->bnd"}> : () -> ()
    %cst_31 = arith.constant dense<0.000000e+00> : vector<2x8x8xf32>
    %89 = tpu.matmul %81, %75, %cst_31 {dimension_numbers = #tpu.dot_dimension_numbers<[2], [1], [1], [2], [0, 0, 0, 1, 1, 2], [0], [0]>} : vector<2x8x8xf32>, vector<2x8x8xf32>, vector<2x8x8xf32> -> vector<2x8x8xf32>
    "tpu.trace_stop"() : () -> ()
    %90 = vector.broadcast %88 : vector<2x8x1xf32> to vector<2x8x8xf32>
    %91 = arith.mulf %89, %90 : vector<2x8x8xf32>
    %92 = arith.addf %73, %91 : vector<2x8x8xf32>
    %c0_32 = arith.constant 0 : index
    %c0_33 = arith.constant 0 : index
    %c24 = arith.constant 24 : index
    %93 = vector.load %arg7[%c0_32, %c0_33, %c24] : memref<2x8x32xf32, #tpu.memory_space<vmem>>, vector<2x8x8xf32>
    tpu.vector_store %arg7[%c0_32, %c0_33, %c24], %92 {strides = array<i32>} : memref<2x8x32xf32, #tpu.memory_space<vmem>>, vector<2x8x8xf32>,
    %c0_34 = arith.constant 0 : index
    %c0_35 = arith.constant 0 : index
    %c0_36 = arith.constant 0 : index
    %94 = vector.load %arg7[%c0_34, %c0_35, %c0_36] : memref<2x8x32xf32, #tpu.memory_space<vmem>>, vector<2x8x32xf32>
    %95 = vector.shape_cast %94 : vector<2x8x32xf32> to vector<16x32xf32>
    %c0_37 = arith.constant 0 : index
    %c0_38 = arith.constant 0 : index
    %96 = vector.load %arg4[%c0_37, %c0_38] : memref<32x32xf32, #tpu.memory_space<vmem>>, vector<32x32xf32>
    %cst_39 = arith.constant dense<0.000000e+00> : vector<16x32xf32>
    %97 = tpu.matmul %95, %96, %cst_39 {dimension_numbers = #tpu.dot_dimension_numbers<[1], [0], [0], [1], [0, 0, 1, 1], [], []>} : vector<16x32xf32>, vector<32x32xf32>, vector<16x32xf32> -> vector<16x32xf32>
    %c0_40 = arith.constant 0 : index
    %c0_41 = arith.constant 0 : index
    %98 = vector.load %arg5[%c0_40, %c0_41] : memref<1x32xf32, #tpu.memory_space<vmem>>, vector<1x32xf32>
    %99 = vector.broadcast %98 : vector<1x32xf32> to vector<16x32xf32>
    %100 = arith.addf %97, %99 : vector<16x32xf32>
    %cst_42 = arith.constant 0.000000e+00 : f32
    %101 = vector.broadcast %cst_42 : f32 to vector<16x32xf32>
    %102 = arith.maximumf %100, %101 : vector<16x32xf32>
    %103 = arith.addf %95, %102 : vector<16x32xf32>
    %c0_43 = arith.constant 0 : index
    %c0_44 = arith.constant 0 : index
    %104 = vector.load %arg6[%c0_43, %c0_44] : memref<16x32xf32, #tpu.memory_space<vmem>>, vector<16x32xf32>
    tpu.vector_store %arg6[%c0_43, %c0_44], %103 {strides = array<i32>} : memref<16x32xf32, #tpu.memory_space<vmem>>, vector<16x32xf32>,
    return
  }
  func.func @transform_0(%arg0: i32) -> (i32, i32) {
    %c0_i32 = arith.constant 0 : i32
    %c0_i32_0 = arith.constant 0 : i32
    return %arg0, %c0_i32 : i32, i32
  }
  func.func @transform_1(%arg0: i32) -> (i32, i32) {
    %c0_i32 = arith.constant 0 : i32
    %c0_i32_0 = arith.constant 0 : i32
    %c0_i32_1 = arith.constant 0 : i32
    return %c0_i32, %c0_i32_0 : i32, i32
  }
  func.func @transform_2(%arg0: i32) -> (i32, i32) {
    %c0_i32 = arith.constant 0 : i32
    %c0_i32_0 = arith.constant 0 : i32
    %c0_i32_1 = arith.constant 0 : i32
    return %c0_i32, %c0_i32_0 : i32, i32
  }
  func.func @transform_3(%arg0: i32) -> (i32, i32) {
    %c0_i32 = arith.constant 0 : i32
    %c0_i32_0 = arith.constant 0 : i32
    %c0_i32_1 = arith.constant 0 : i32
    return %c0_i32, %c0_i32_0 : i32, i32
  }
  func.func @transform_4(%arg0: i32) -> (i32, i32) {
    %c0_i32 = arith.constant 0 : i32
    %c0_i32_0 = arith.constant 0 : i32
    %c0_i32_1 = arith.constant 0 : i32
    return %c0_i32, %c0_i32_0 : i32, i32
  }
  func.func @transform_5(%arg0: i32) -> (i32, i32) {
    %c0_i32 = arith.constant 0 : i32
    %c0_i32_0 = arith.constant 0 : i32
    return %arg0, %c0_i32 : i32, i32
  }
}

</mosaic_0001>

<bundles_post_ra>
// kernel: tpu_custom_call.1
= control target key start
LH: loop header
LB: loop body
LE: loop exit
PB: predicated region body
PF: predicated region fallthrough
CT: control target
= control target key end

     0   :  { %10 = vsyncpa [#allocation4], 0  ;;  %s1121_s0 = inlined_call_operand.hbm [shape: f32[16,16], index: 0, kind: input, shape index: {}]   ;;  %s1122_s1 = inlined_call_operand.hbm [shape: f32[16,96], index: 1, kind: input, shape index: {}]   ;;  %s1123_s2 = inlined_call_operand.vmem [shape: f32[1,96], index: 2, kind: input, shape index: {}]   ;;  %s1124_s3 = inlined_call_operand.hbm [shape: f32[32,32], index: 3, kind: input, shape index: {}]   ;;  %s1125_s4 = inlined_call_operand.vmem [shape: f32[1,32], index: 4, kind: input, shape index: {}]   ;;  %s1126_s5 = inlined_call_operand.hbm [shape: f32[16,32], index: 5, kind: output, shape index: {}]  }
   0x1   :  { %11 = vsyncpa [#allocation7], 0 }
   0x2   :  { %12 = vsyncpa [#allocation5], 0  ;;  %s30_s20 = sshll.u32 %s1122_s1, 4  ;;  %s951_s21 = smov [#allocation6]   ;;  %s31_s20 = int_to_ptr.hbm [resolvable:$true] %s30_s20 }
   0x3   :  { %s32_s22 = sshll.u32 %s951_s21, 4  ;;  %s17_s25 = sshll.u32 %s1121_s0, 4  ;;  %s33_s22 = int_to_ptr.vmem [resolvable:$true] %s32_s22  ;;  %s18_s25 = int_to_ptr.hbm [resolvable:$true] %s17_s25 }
   0x4   :  { %s952_s26 = smov 128   ;;  %s953_s27 = smov 8  }
   0x5   :  { %38 = dma.hbm_to_vmem [thread:$0]  %s31_s20, 256, %s33_s22, [#allocation7], %s952_s26, %s952_s26, %s953_s27  }
   0x6   :  { %s954_s28 = smov [#allocation3]   ;;  %s45_s1 = sshll.u32 %s1124_s3, 4  ;;  %s46_s1 = int_to_ptr.hbm [resolvable:$true] %s45_s1 }
   0x7   :  { %s19_s29 = sshll.u32 %s954_s28, 4  ;;  %s955_s0 = smov [#allocation8]   ;;  %s20_s29 = int_to_ptr.vmem [resolvable:$true] %s19_s29 }
   0x8   :  { %25 = dma.hbm_to_vmem [thread:$0]  %s18_s25, 256, %s20_s29, [#allocation4], %s952_s26, %s952_s26, %s953_s27  }
   0x9   :  { %s47_s7 = sshll.u32 %s955_s0, 4  ;;  %s48_s7 = int_to_ptr.vmem [resolvable:$true] %s47_s7 }
   0xa   :  { %53 = dma.hbm_to_vmem [thread:$0]  %s46_s1, 512, %s48_s7, [#allocation7], %s952_s26, %s952_s26, %s953_s27  }
   0xb   :  { %945 = dma.done.wait [#allocation4], 256  }
   0xc   :  { %946 = vsyncadd [#allocation4], 4294967040 }
   0xd   :  { %947 = dma.done.wait [#allocation7], 768  }
   0xe   :  { %948 = vsyncadd [#allocation7], 4294966528  ;;  %v71_v0 = vld [vmem:[#allocation6 + $0x8] sm:$0xff]  ;;  %v70_v1 = vld [vmem:[#allocation6] sm:$0xff]  ;;  %vm76_vm0 = vcmask 130048   ;;  %s956_s9 = smov 80  }
   0xf   :  { %97 = vmatpush.msra.mxu0 %v71_v0  ;;  %v68_v2 = vld [vmem:[#allocation3] sm:$0xff]  ;;  %v69_v3 = vld [vmem:[#allocation3 + $0x8] sm:$0xff]  ;;  %v815_v4 = vld [vmem:[%s1123_s2] ss:$0 sm:$0xff]  ;;  %s957_s10 = smov 88   ;;  %s958_s11 = smov 96  }
  0x10   :  { %s959_s12 = smov 120   ;;  %s960_s2 = smov 112   ;;  %vm109_vm1 = vcmask 64512   ;;  %vm391_vm2 = vcmask 130112   ;;  %vm540_vm3 = vcmask 195712   ;;  %vm689_vm4 = vcmask 261312  }
  0x11   :  { %98 = vmatpush.msra.mxu0 %v70_v1  ;;  %s961_s13 = smov 104   ;;  %s962_s14 = smov 72   ;;  %vm702_vm5 = vcmask 261120  }
  0x12   :  { %758 = vmatmul.msk.f32.vlgmr.msra.gmra.mxu0 %vm76_vm0, %v68_v2  ;;  %s963_s15 = smov 56   ;;  %s964_s16 = smov 40  }
  0x13   :  { %s965_s17 = smov 64   ;;  %s966_s18 = smov 48  }
  0x14   :  { %s967_s19 = smov 16   ;;  %s968_s20 = smov 24  }
  0x15   :  { %s969_s23 = smov [#allocation9]   ;;  %s744_s29 = sshll.u32 %s1126_s5, 4  ;;  %s745_s29 = int_to_ptr.hbm [resolvable:$true] %s744_s29 }
  0x16   :  { %s742_s24 = sshll.u32 %s969_s23, 4  ;;  %s743_s24 = int_to_ptr.vmem [resolvable:$true] %s742_s24 }
  0x1a   :  { %759 = vmatmul.msk.f32.gmra.mxu0 %vm76_vm0, %v69_v3 }
  0x8f   :  { %v100_v5 = vpop.f32.mrf.mxu0 }
  0x90   :  { %v1021_v6 = vadd.f32 %v815_v4, %v100_v5 }
  0x92   :  { %396 = vrot.lane.b32.xlu2 %v1021_v6, %s956_s9  ;;  %247 = vrot.lane.b32.xlu1 %v1021_v6, %s957_s10 }
  0x93   :  { %107 = vrot.lane.b32.xlu0 %v1021_v6, %s958_s11 }
  0x97   :  { %v103_v7 = vpop.f32.mrf.mxu0 }
  0x98   :  { %v1026_v8 = vadd.f32 %v815_v4, %v103_v7 }
  0x9a   :  { %275 = vrot.lane.b32.xlu2 %v1026_v8, %s957_s10  ;;  %245 = vrot.lane.b32.xlu1 %v1021_v6, %s959_s12  ;;  %v810_v9 = vpack.i.bf16 %v1026_v8, %v1021_v6 }
  0x9b   :  { %135 = vrot.lane.b32.xlu0 %v1026_v8, %s958_s11 }
  0xa2   :  { %424 = vrot.lane.b32.xlu2 %v1026_v8, %s956_s9  ;;  %394 = vrot.lane.b32.xlu1 %v1021_v6, %s960_s2 }
  0xa3   :  { %273 = vrot.lane.b32.xlu0 %v1026_v8, %s959_s12 }
  0xaa   :  { %543 = vrot.lane.b32.xlu2 %v1021_v6, %s961_s13  ;;  %422 = vrot.lane.b32.xlu1 %v1026_v8, %s960_s2 }
  0xab   :  { %545 = vrot.lane.b32.xlu0 %v1021_v6, %s962_s14 }
  0xb2   :  { %811 = vrot.lane.b32.xlu2 %v810_v9, %s963_s15  ;;  %571 = vrot.lane.b32.xlu1 %v1026_v8, %s961_s13 }
  0xb3   :  { %573 = vrot.lane.b32.xlu0 %v1026_v8, %s962_s14 }
  0xba   :  { %625 = vrot.lane.b32.xlu2 %v1021_v6, %s964_s16  ;;  %806 = vrot.lane.b32.xlu1 %v810_v9, %s965_s17 }
  0xec   :  { %v397_v10 = vpop.permute.xlu2 %396 }
  0xf4   :  { %v276_v11 = vpop.permute.xlu2 %275 }
  0xfc   :  { %v425_v12 = vpop.permute.xlu2 %424 }
 0x104   :  { %v544_v13 = vpop.permute.xlu2 %543  ;;  %v248_v14 = vpop.permute.xlu1 %247 }
 0x105   :  { %v108_v15 = vpop.permute.xlu0 %107  ;;  %766 = vmatpush.xpose.msk.msra.mxu1 %vm109_vm1, %v248_v14 }
 0x106   :  { %760 = vmatpush.xpose.msk.msra.mxu2 %vm109_vm1, %v108_v15 }
 0x109   :  { %772 = vmatpush.xpose.msk.msrb.mxu1 %vm109_vm1, %v397_v10  ;;  %761 = vmatmul.msk.f32.vlgmr.msra.gmra.mxu2 %vm109_vm1, %v1021_v6 }
 0x10c   :  { %v1048_v16 = vpop.permute.xlu2 %811  ;;  %v246_v17 = vpop.permute.xlu1 %245 }
 0x10d   :  { %v136_v18 = vpop.permute.xlu0 %135  ;;  %767 = vmatmul.msk.f32.vlgmr.msra.gmra.mxu1 %vm109_vm1, %v246_v17  ;;  %v814_v19 = vunpack.i.h.bf16 %v1048_v16  ;;  %v813_v59 = vunpack.i.l.bf16 %v1048_v16 }
 0x10e   :  { %762 = vmatpush.xpose.msk.msrb.mxu2 %vm109_vm1, %v136_v18 }
 0x10f   :  { %374 = vmatpush.msrb.mxu0 %v814_v19 }
 0x111   :  { %763 = vmatmul.msk.f32.vlgmr.msrb.gmra.mxu2 %vm109_vm1, %v1026_v8 }
 0x112   :  { %768 = vmatpush.xpose.msk.msra.mxu2 %vm109_vm1, %v276_v11 }
 0x114   :  { %v395_v20 = vpop.permute.xlu1 %394  ;;  %v626_v45 = vpop.permute.xlu2 %625 }
 0x115   :  { %v274_v21 = vpop.permute.xlu0 %273  ;;  %773 = vmatmul.msk.f32.vlgmr.msrb.gmra.mxu1 %vm109_vm1, %v395_v20 }
 0x116   :  { %774 = vmatpush.xpose.msk.msrb.mxu2 %vm109_vm1, %v425_v12 }
 0x119   :  { %769 = vmatmul.msk.f32.vlgmr.msra.gmra.mxu2 %vm109_vm1, %v274_v21 }
 0x11c   :  { %v423_v22 = vpop.permute.xlu1 %422 }
 0x11d   :  { %v546_v23 = vpop.permute.xlu0 %545 }
 0x11e   :  { %778 = vmatpush.xpose.msk.msra.mxu1 %vm109_vm1, %v546_v23 }
 0x121   :  { %775 = vmatmul.msk.f32.vlgmr.msrb.gmra.mxu2 %vm109_vm1, %v423_v22  ;;  %779 = vmatmul.msk.f32.vlgmr.msra.gmra.mxu1 %vm109_vm1, %v544_v13 }
 0x124   :  { %v572_v24 = vpop.permute.xlu1 %571 }
 0x125   :  { %v574_v25 = vpop.permute.xlu0 %573 }
 0x126   :  { %780 = vmatpush.xpose.msk.msra.mxu2 %vm109_vm1, %v574_v25 }
 0x129   :  { %781 = vmatmul.msk.f32.vlgmr.msra.gmra.mxu2 %vm109_vm1, %v572_v24 }
 0x12c   :  { %v807_v26 = vpop.permute.xlu1 %806 }
 0x12d   :  { %v808_v27 = vunpack.i.l.bf16 %v807_v26  ;;  %v809_v28 = vunpack.i.h.bf16 %v807_v26 }
 0x12f   :  { %208 = vmatpush.msra.mxu3 %v808_v27 }
 0x131   :  { %234 = vmatpush.msrb.mxu3 %v809_v28 }
 0x18a   :  { %v270_v29 = vpop.f32.mrf.mxu1 }
 0x18b   :  { %v301_v30 = vsel %vm109_vm1, %v270_v29, -inf }
 0x18c   :  { %v131_v31 = vpop.f32.mrf.mxu2  ;;  %302 = vmax.xlane.f32.xlu1 %v301_v30 }
 0x18d   :  { %v161_v32 = vsel %vm109_vm1, %v131_v31, -inf }
 0x18e   :  { %162 = vmax.xlane.f32.xlu2 %v161_v32 }
 0x192   :  { %v419_v33 = vpop.f32.mrf.mxu1 }
 0x193   :  { %v450_v34 = vsel %vm109_vm1, %v419_v33, -inf }
 0x194   :  { %v158_v35 = vpop.f32.mrf.mxu2 }
 0x195   :  { %v164_v36 = vsel %vm109_vm1, %v158_v35, -inf }
 0x196   :  { %451 = vmax.xlane.f32.xlu2 %v450_v34  ;;  %165 = vmax.xlane.f32.xlu0 %v164_v36 }
 0x19c   :  { %v298_v39 = vpop.f32.mrf.mxu2 }
 0x19d   :  { %v304_v40 = vsel %vm109_vm1, %v298_v39, -inf }
 0x19e   :  { %v568_v37 = vpop.f32.mrf.mxu1 }
 0x19f   :  { %v599_v38 = vsel %vm109_vm1, %v568_v37, -inf }
 0x1a0   :  { %600 = vmax.xlane.f32.xlu0 %v599_v38 }
 0x1a4   :  { %v447_v41 = vpop.f32.mrf.mxu2 }
 0x1a5   :  { %476 = vrot.lane.b32.xlu1 %v1021_v6, %s966_s18  ;;  %v453_v42 = vsel %vm109_vm1, %v447_v41, -inf }
 0x1a8   :  { %305 = vmax.xlane.f32.xlu0 %v304_v40 }
 0x1ac   :  { %v596_v43 = vpop.f32.mrf.mxu2 }
 0x1ad   :  { %v602_v44 = vsel %vm109_vm1, %v596_v43, -inf }
 0x1ae   :  { %502 = vrot.lane.b32.xlu2 %v1026_v8, %s966_s18 }
 0x1b0   :  { %454 = vmax.xlane.f32.xlu0 %v453_v42 }
 0x1b8   :  { %603 = vmax.xlane.f32.xlu0 %v602_v44 }
 0x1cc   :  { %651 = vrot.lane.b32.xlu0 %v1026_v8, %s964_s16 }
 0x1ff   :  { %v303_v46 = vpop.xlane.xlu1 %302 }
 0x200   :  { %v307_v47 = vsub.f32 %v270_v29, %v303_v46 }
 0x201   :  { %v163_v48 = vpop.xlane.xlu2 %162 }
 0x202   :  { %v309_v49 = vmul.f32 1.442695, %v307_v47  ;;  %v167_v50 = vsub.f32 %v131_v31, %v163_v48 }
 0x204   :  { %817 = vpow2.f32 %v309_v49  ;;  %v169_v51 = vmul.f32 1.442695, %v167_v50 }
 0x206   :  { %819 = vpow2.f32 %v169_v51 }
 0x209   :  { %v452_v52 = vpop.xlane.xlu2 %451  ;;  %v166_v53 = vpop.xlane.xlu0 %165 }
 0x20a   :  { %v818_v54 = vpop.eup %817  ;;  %v456_v55 = vsub.f32 %v419_v33, %v452_v52  ;;  %v168_v56 = vsub.f32 %v158_v35, %v166_v53 }
 0x20b   :  { %v313_v57 = vsel %vm109_vm1, %v818_v54, 0.0 }
 0x20c   :  { %v820_v58 = vpop.eup %819  ;;  %v458_v60 = vmul.f32 1.442695, %v456_v55  ;;  %v171_v61 = vmul.f32 1.442695, %v168_v56  ;;  %314 = vadd.xlane.f32.xlu1 %v313_v57 }
 0x20d   :  { %764 = vmatmul.msk.f32.vlgmr.msra.gmra.mxu3 %vm109_vm1, %v820_v58  ;;  %v173_v24 = vsel %vm109_vm1, %v820_v58, 0.0 }
 0x20e   :  { %821 = vpow2.f32 %v458_v60  ;;  %348 = vmatpush.msra.mxu3 %v813_v59 }
 0x20f   :  { %823 = vpow2.f32 %v171_v61 }
 0x211   :  { %v503_v62 = vpop.permute.xlu2 %502 }
 0x212   :  { %523 = vmatpush.msra.mxu0 %v503_v62 }
 0x213   :  { %v601_v63 = vpop.xlane.xlu0 %600 }
 0x214   :  { %v822_v0 = vpop.eup %821  ;;  %v605_v1 = vsub.f32 %v568_v37, %v601_v63 }
 0x215   :  { %v824_v2 = vpop.eup %823  ;;  %v462_v3 = vsel %vm109_vm1, %v822_v0, 0.0 }
 0x216   :  { %v607_v4 = vmul.f32 1.442695, %v605_v1  ;;  %765 = vmatmul.msk.f32.vlgmr.msrb.gmra.mxu3 %vm109_vm1, %v824_v2  ;;  %463 = vadd.xlane.f32.xlu2 %v462_v3  ;;  %v176_v27 = vsel %vm109_vm1, %v824_v2, 0.0 }
 0x217   :  { %v477_v5 = vpop.permute.xlu1 %476 }
 0x218   :  { %825 = vpow2.f32 %v607_v4  ;;  %497 = vmatpush.msrb.mxu3 %v477_v5 }
 0x21b   :  { %v306_v7 = vpop.xlane.xlu0 %305 }
 0x21c   :  { %v308_v9 = vsub.f32 %v298_v39, %v306_v7 }
 0x21e   :  { %v826_v10 = vpop.eup %825  ;;  %v311_v11 = vmul.f32 1.442695, %v308_v9  ;;  %770 = vmatmul.msk.f32.vlgmr.msra.gmra.mxu3 %vm109_vm1, %v818_v54 }
 0x21f   :  { %646 = vmatpush.msra.mxu3 %v626_v45  ;;  %v611_v12 = vsel %vm109_vm1, %v826_v10, 0.0 }
 0x220   :  { %827 = vpow2.f32 %v311_v11  ;;  %612 = vadd.xlane.f32.xlu0 %v611_v12 }
 0x223   :  { %v455_v13 = vpop.xlane.xlu0 %454 }
 0x224   :  { %v457_v14 = vsub.f32 %v447_v41, %v455_v13 }
 0x226   :  { %v828_v15 = vpop.eup %827  ;;  %v460_v16 = vmul.f32 1.442695, %v457_v14  ;;  %776 = vmatmul.msk.f32.vlgmr.msrb.gmra.mxu3 %vm109_vm1, %v822_v0 }
 0x227   :  { %771 = vmatmul.msk.f32.vlgmr.msrb.gmra.mxu0 %vm109_vm1, %v828_v15  ;;  %v316_v17 = vsel %vm109_vm1, %v828_v15, 0.0 }
 0x228   :  { %829 = vpow2.f32 %v460_v16  ;;  %317 = vadd.xlane.f32.xlu1 %v316_v17 }
 0x22b   :  { %v604_v18 = vpop.xlane.xlu0 %603 }
 0x22c   :  { %v606_v19 = vsub.f32 %v596_v43, %v604_v18 }
 0x22e   :  { %v830_v20 = vpop.eup %829  ;;  %v609_v21 = vmul.f32 1.442695, %v606_v19  ;;  %782 = vmatmul.msk.f32.vlgmr.msra.gmra.mxu3 %vm109_vm1, %v826_v10 }
 0x22f   :  { %777 = vmatmul.msk.f32.vlgmr.msra.gmra.mxu0 %vm109_vm1, %v830_v20  ;;  %v465_v22 = vsel %vm109_vm1, %v830_v20, 0.0 }
 0x230   :  { %831 = vpow2.f32 %v609_v21  ;;  %466 = vadd.xlane.f32.xlu2 %v465_v22 }
 0x236   :  { %v832_v23 = vpop.eup %831 }
 0x237   :  { %v614_v25 = vsel %vm109_vm1, %v832_v23, 0.0 }
 0x238   :  { %174 = vadd.xlane.f32.xlu2 %v173_v24  ;;  %615 = vadd.xlane.f32.xlu1 %v614_v25  ;;  %v697_v24 = vld [vmem:[#allocation8 + $0x18] sm:$0xff]  ;;  %v696_v25 = vld [vmem:[#allocation8 + $0x10] sm:$0xff] }
 0x239   :  { %721 = vmatpush.msrb.mxu1 %v697_v24 }
 0x23b   :  { %722 = vmatpush.msrb.mxu1 %v696_v25 }
 0x23e   :  { %v652_v26 = vpop.permute.xlu0 %651 }
 0x23f   :  { %672 = vmatpush.msrb.mxu0 %v652_v26  ;;  %v695_v26 = vld [vmem:[#allocation8 + $0x8] sm:$0xff] }
 0x240   :  { %177 = vadd.xlane.f32.xlu1 %v176_v27  ;;  %783 = vmatmul.msk.f32.vlgmr.msrb.gmra.mxu0 %vm109_vm1, %v832_v23  ;;  %v694_v27 = vld [vmem:[#allocation8] sm:$0xff] }
 0x241   :  { %723 = vmatpush.msrb.mxu1 %v695_v26 }
 0x243   :  { %724 = vmatpush.msrb.mxu1 %v694_v27 }
 0x27f   :  { %v315_v28 = vpop.xlane.xlu1 %314 }
 0x280   :  { %833 = vrcp.f32 %v315_v28 }
 0x286   :  { %v834_v31 = vpop.eup %833 }
 0x287   :  { %v321_v32 = vmul.f32 %v834_v31, %v315_v28 }
 0x289   :  { %v464_v30 = vpop.xlane.xlu2 %463  ;;  %v323_v35 = vsub.f32 2.0, %v321_v32 }
 0x28a   :  { %835 = vrcp.f32 %v464_v30 }
 0x28b   :  { %v325_v39 = vmul.f32 %v834_v31, %v323_v35 }
 0x290   :  { %v210_v29 = vpop.f32.mrf.mxu3  ;;  %v836_v37 = vpop.eup %835 }
 0x291   :  { %v470_v38 = vmul.f32 %v836_v37, %v464_v30 }
 0x293   :  { %v613_v36 = vpop.xlane.xlu0 %612  ;;  %v472_v45 = vsub.f32 2.0, %v470_v38 }
 0x295   :  { %v474_v51 = vmul.f32 %v836_v37, %v472_v45 }
 0x299   :  { %v1093_v33 = vpop.f32.mrf.mxu3 }
 0x29b   :  { %v318_v34 = vpop.xlane.xlu1 %317 }
 0x29c   :  { %837 = vrcp.f32 %v318_v34 }
 0x29d   :  { %839 = vrcp.f32 %v613_v36 }
 0x2a1   :  { %v350_v40 = vpop.f32.mrf.mxu3 }
 0x2a2   :  { %v838_v41 = vpop.eup %837  ;;  %v379_v42 = vmul.f32 %v350_v40, %v325_v39 }
 0x2a3   :  { %v322_v43 = vmul.f32 %v838_v41, %v318_v34  ;;  %v467_v44 = vpop.xlane.xlu2 %466  ;;  %v840_v46 = vpop.eup %839 }
 0x2a4   :  { %383 = vrot.lane.b32.xlu0 %v379_v42, %s953_s27  ;;  %841 = vrcp.f32 %v467_v44  ;;  %v376_v48 = vpop.f32.mrf.mxu0  ;;  %v619_v50 = vmul.f32 %v840_v46, %v613_v36  ;;  %v816_v42 = vld [vmem:[%s1125_s4] ss:$0 sm:$0xff] }
 0x2a5   :  { %v324_v47 = vsub.f32 2.0, %v322_v43 }
 0x2a6   :  { %v621_v59 = vsub.f32 2.0, %v619_v50 }
 0x2a7   :  { %v326_v49 = vmul.f32 %v838_v41, %v324_v47 }
 0x2a8   :  { %v623_v63 = vmul.f32 %v840_v46, %v621_v59 }
 0x2a9   :  { %v380_v52 = vmul.f32 %v376_v48, %v326_v49  ;;  %v499_v53 = vpop.f32.mrf.mxu3 }
 0x2aa   :  { %v842_v54 = vpop.eup %841  ;;  %v528_v55 = vmul.f32 %v499_v53, %v474_v51 }
 0x2ab   :  { %v471_v56 = vmul.f32 %v842_v54, %v467_v44  ;;  %v175_v57 = vpop.xlane.xlu2 %174  ;;  %v616_v58 = vpop.xlane.xlu1 %615 }
 0x2ac   :  { %385 = vrot.lane.b32.xlu0 %v380_v52, %s953_s27  ;;  %532 = vrot.lane.b32.xlu2 %v528_v55, %s967_s19  ;;  %843 = vrcp.f32 %v175_v57  ;;  %v525_v62 = vpop.f32.mrf.mxu0 }
 0x2ad   :  { %v473_v60 = vsub.f32 2.0, %v471_v56  ;;  %845 = vrcp.f32 %v616_v58 }
 0x2af   :  { %v475_v61 = vmul.f32 %v842_v54, %v473_v60 }
 0x2b1   :  { %v529_v0 = vmul.f32 %v525_v62, %v475_v61  ;;  %v648_v1 = vpop.f32.mrf.mxu3 }
 0x2b2   :  { %v844_v2 = vpop.eup %843  ;;  %v677_v3 = vmul.f32 %v648_v1, %v623_v63 }
 0x2b3   :  { %v846_v4 = vpop.eup %845  ;;  %v181_v5 = vmul.f32 %v844_v2, %v175_v57  ;;  %v178_v7 = vpop.xlane.xlu1 %177 }
 0x2b4   :  { %v620_v9 = vmul.f32 %v846_v4, %v616_v58  ;;  %534 = vrot.lane.b32.xlu2 %v529_v0, %s967_s19  ;;  %847 = vrcp.f32 %v178_v7  ;;  %681 = vrot.lane.b32.xlu1 %v677_v3, %s968_s20 }
 0x2b5   :  { %v183_v10 = vsub.f32 2.0, %v181_v5 }
 0x2b6   :  { %v622_v12 = vsub.f32 2.0, %v620_v9 }
 0x2b7   :  { %v185_v11 = vmul.f32 %v844_v2, %v183_v10 }
 0x2b8   :  { %v624_v17 = vmul.f32 %v846_v4, %v622_v12 }
 0x2b9   :  { %v239_v13 = vmul.f32 %v210_v29, %v185_v11 }
 0x2ba   :  { %v848_v14 = vpop.eup %847 }
 0x2bb   :  { %v241_v15 = vadd.f32 %v239_v13, %v1021_v6  ;;  %v182_v16 = vmul.f32 %v848_v14, %v178_v7 }
 0x2bd   :  { %243 = vst.msk [vmem:[#allocation2] sm:$0xff] %vm109_vm1, %v241_v15  ;;  %v184_v18 = vsub.f32 2.0, %v182_v16  ;;  %v674_v19 = vpop.f32.mrf.mxu0 }
 0x2be   :  { %v678_v20 = vmul.f32 %v674_v19, %v624_v17 }
 0x2bf   :  { %v186_v21 = vmul.f32 %v848_v14, %v184_v18 }
 0x2c0   :  { %683 = vrot.lane.b32.xlu0 %v678_v20, %s968_s20 }
 0x2c1   :  { %v240_v22 = vmul.f32 %v1093_v33, %v186_v21 }
 0x2c3   :  { %v242_v23 = vadd.f32 %v240_v22, %v1026_v8 }
 0x2c5   :  { %244 = vst.msk [vmem:[#allocation2 + $0x8] sm:$0xff] %vm109_vm1, %v242_v23 }
 0x306   :  { %v533_v28 = vpop.permute.xlu2 %532 }
 0x307   :  { %v538_v31 = vadd.f32 %v533_v28, %v1021_v6 }
 0x30e   :  { %v535_v32 = vpop.permute.xlu2 %534 }
 0x30f   :  { %v539_v35 = vadd.f32 %v535_v32, %v1026_v8 }
 0x316   :  { %v384_v29 = vpop.permute.xlu0 %383 }
 0x317   :  { %v389_v30 = vadd.f32 %v384_v29, %v1021_v6 }
 0x319   :  { %392 = vst.msk [vmem:[#allocation2] sm:$0xff] %vm391_vm2, %v389_v30 }
 0x31a   :  { %541 = vst.msk [vmem:[#allocation2] sm:$0xff] %vm540_vm3, %v538_v31 }
 0x31e   :  { %v386_v33 = vpop.permute.xlu0 %385 }
 0x31f   :  { %v390_v34 = vadd.f32 %v386_v33, %v1026_v8 }
 0x321   :  { %393 = vst.msk [vmem:[#allocation2 + $0x8] sm:$0xff] %vm391_vm2, %v390_v34 }
 0x322   :  { %542 = vst.msk [vmem:[#allocation2 + $0x8] sm:$0xff] %vm540_vm3, %v539_v35 }
 0x326   :  { %v682_v36 = vpop.permute.xlu1 %681 }
 0x327   :  { %v687_v37 = vadd.f32 %v682_v36, %v1021_v6 }
 0x329   :  { %690 = vst.msk [vmem:[#allocation2] sm:$0xff] %vm689_vm4, %v687_v37 }
 0x330   :  { %v692_v38 = vld [vmem:[#allocation2] sm:$0xff] }
 0x331   :  { %784 = vmatmul.msk.f32.vlgmr.msrb.gmra.mxu1 %vm702_vm5, %v692_v38 }
 0x332   :  { %v684_v39 = vpop.permute.xlu0 %683 }
 0x333   :  { %v688_v40 = vadd.f32 %v684_v39, %v1026_v8 }
 0x335   :  { %691 = vst.msk [vmem:[#allocation2 + $0x8] sm:$0xff] %vm689_vm4, %v688_v40 }
 0x33c   :  { %v693_v41 = vld [vmem:[#allocation2 + $0x8] sm:$0xff] }
 0x33d   :  { %785 = vmatmul.msk.f32.gmra.mxu1 %vm702_vm5, %v693_v41 }
 0x3ae   :  { %v726_v43 = vpop.f32.mrf.mxu1 }
 0x3af   :  { %v727_v44 = vadd.f32 %v816_v42, %v726_v43 }
 0x3b1   :  { %v732_v45 = vmax.f32 %v727_v44, 0.0 }
 0x3b3   :  { %v734_v6 = vadd.f32 %v732_v45, %v692_v38 }
 0x3b5   :  { %736 = vst.msk [vmem:[#allocation9] sm:$0xff] %vm702_vm5, %v734_v6 }
 0x3ba   :  { %v729_v46 = vpop.f32.mrf.mxu1 }
 0x3bb   :  { %v730_v47 = vadd.f32 %v816_v42, %v729_v46 }
 0x3bd   :  { %v733_v8 = vmax.f32 %v730_v47, 0.0 }
 0x3bf   :  { %v735_v48 = vadd.f32 %v733_v8, %v693_v41 }
 0x3c1   :  { %737 = vst.msk [vmem:[#allocation9 + $0x8] sm:$0xff] %vm702_vm5, %v735_v48 }
 0x3c2   :  { %750 = dma.vmem_to_hbm [thread:$0]  %s743_s24, 256, %s745_s29, [#allocation5], %s952_s26, %s952_s26, %s953_s27  }
 0x3c3   :  { %949 = dma.done.wait [#allocation5], 256  }
 0x3c4   :  { %950 = vsyncadd [#allocation5], 4294967040 }
 0x3c5   :  { %755 = vsyncpa [#allocation4], 1 }
 0x3c6   :  { %756 = vsyncpa [#allocation7], 1 }
 0x3c7   :  { %757 = vsyncpa [#allocation5], 1 }

</bundles_post_ra>
